<compile_context>
chip_gen: v5e
topology: v5e:2x2
jax: 0.10.0
libtpu: 0.0.40
codegen_flags: <defaults>
</compile_context>

<pallas_src>
import functools

import jax
import jax.numpy as jnp
from jax.experimental import pallas as pl
from jax.experimental.pallas import tpu as pltpu

_LANE = 128
_SUBLANE = 8


def _round_up(n, m):
    return (n + m - 1) // m * m


def autoencoder_kernel(x_ref, we_ref, be_ref, wd_ref, bd_ref, enc_ref, dec_ref):
    # encoded = relu(x @ We + be); We is pre-transposed to [in, out], bf16.
    x = x_ref[...]                                                # (TB, Dp) bf16
    enc = jnp.dot(x, we_ref[...], preferred_element_type=jnp.float32)
    enc = jnp.maximum(enc + be_ref[...], 0.0)                     # f32 epilogue
    enc_ref[...] = enc.astype(enc_ref.dtype)

    # decoded = encoded @ Wd + bd; feed the MXU bf16, accumulate f32.
    dec = jnp.dot(enc.astype(jnp.bfloat16), wd_ref[...],
                  preferred_element_type=jnp.float32)
    dec_ref[...] = (dec + bd_ref[...]).astype(dec_ref.dtype)


def prepare_params(w_enc, b_enc, w_dec, b_dec):
    """One-time parameter prep (hoisted out of the per-forward path):
    transpose PyTorch [out, in] weights to [in, out], zero-pad feature dims to
    multiples of 128 lanes, cast weights to bf16 for the MXU. Biases stay f32.
    w_enc: [H, D], b_enc: [H], w_dec: [D, H], b_dec: [D]."""
    H, D = w_enc.shape
    Dp = _round_up(D, _LANE)
    Hp = _round_up(H, _LANE)

    we_t = (jnp.zeros((Dp, Hp), jnp.float32)
            .at[:D, :H].set(jnp.asarray(w_enc, jnp.float32).T)
            .astype(jnp.bfloat16))
    wd_t = (jnp.zeros((Hp, Dp), jnp.float32)
            .at[:H, :D].set(jnp.asarray(w_dec, jnp.float32).T)
            .astype(jnp.bfloat16))
    be = jnp.zeros((1, Hp), jnp.float32).at[:, :H].set(
        jnp.asarray(b_enc, jnp.float32))
    bd = jnp.zeros((1, Dp), jnp.float32).at[:, :D].set(
        jnp.asarray(b_dec, jnp.float32))
    return we_t, be, wd_t, bd


def _pick_batch_tile(B, Dp, Hp, vmem_budget_bytes=48 * 1024 * 1024):
    """Largest power-of-two batch tile (<= 512 rows) whose double-buffered
    x-in (bf16) + enc/dec-out (f32) tiles plus the resident bf16 weights fit
    the VMEM budget (budget sized for v7x's 64 MiB physical VMEM)."""
    resident = 2 * Dp * Hp * 2 + (Hp + Dp) * 4          # bf16 weights + f32 biases
    for tb in (512, 256, 128, 64, 32, 16, 8):
        if tb > _round_up(B, _SUBLANE):
            continue
        per_tile = 2 * tb * (Dp * 2 + Hp * 4 + Dp * 4)  # 2x double-buffering
        if resident + per_tile <= vmem_budget_bytes:
            return tb
    return _SUBLANE


@functools.partial(jax.jit, static_argnames=("h",))
def autoencoder_forward(x, we_t, be, wd_t, bd, *, h):
    """x: [B, D] (any float dtype). Prepared params from prepare_params().
    Returns (encoded [B, h], decoded [B, D]) in float32."""
    B, D = x.shape
    Dp, Hp = we_t.shape
    tb = _pick_batch_tile(B, Dp, Hp)
    Bp = _round_up(max(B, tb), tb)

    # Pad batch to a multiple of the tile and features to the lane-padded Dp.
    xp = jnp.zeros((Bp, Dp), jnp.bfloat16).at[:B, :D].set(
        x.astype(jnp.bfloat16))

    enc_p, dec_p = pl.pallas_call(
        autoencoder_kernel,
        out_shape=(
            jax.ShapeDtypeStruct((Bp, Hp), jnp.float32),
            jax.ShapeDtypeStruct((Bp, Dp), jnp.float32),
        ),
        grid=(Bp // tb,),
        in_specs=[
            pl.BlockSpec((tb, Dp), lambda i: (i, 0)),   # x: pipelined per tile
            pl.BlockSpec((Dp, Hp), lambda i: (0, 0)),   # We: resident
            pl.BlockSpec((1, Hp), lambda i: (0, 0)),    # be: resident
            pl.BlockSpec((Hp, Dp), lambda i: (0, 0)),   # Wd: resident
            pl.BlockSpec((1, Dp), lambda i: (0, 0)),    # bd: resident
        ],
        out_specs=(
            pl.BlockSpec((tb, Hp), lambda i: (i, 0)),
            pl.BlockSpec((tb, Dp), lambda i: (i, 0)),
        ),
        compiler_params=pltpu.CompilerParams(
            dimension_semantics=("parallel",),
            vmem_limit_bytes=64 * 1024 * 1024,
        ),
    )(xp, we_t, be, wd_t, bd)

    # Slice the zero padding back off.
    return enc_p[:B, :h], dec_p[:B, :D]

# TODO(synk): if D/H grow to the point where both padded weight matrices no
# longer fit VMEM simultaneously, add a trailing "arbitrary" K grid axis with
# an f32 accumulator scratch (worked-matmul pattern).


def _init_linear(key, out_features, in_features):
    """Deterministic PyTorch-style nn.Linear init: U(-1/sqrt(in), 1/sqrt(in))."""
    kw, kb = jax.random.split(key)
    bound = 1.0 / jnp.sqrt(jnp.float32(in_features))
    w = jax.random.uniform(kw, (out_features, in_features), jnp.float32,
                           minval=-bound, maxval=bound)
    b = jax.random.uniform(kb, (out_features,), jnp.float32,
                           minval=-bound, maxval=bound)
    return w, b


if __name__ == "__main__":
    # Small shapes consistent with the module: x [batch, input_dim].
    B, INPUT_DIM, OUTPUT_DIM = 8, 32, 16

    key = jax.random.PRNGKey(0)
    k_x, k_enc, k_dec = jax.random.split(key, 3)

    x = jax.random.normal(k_x, (B, INPUT_DIM), jnp.float32)
    w_enc, b_enc = _init_linear(k_enc, OUTPUT_DIM, INPUT_DIM)   # encoder: D -> H
    w_dec, b_dec = _init_linear(k_dec, INPUT_DIM, OUTPUT_DIM)   # decoder: H -> D

    # One-time prep (transpose + lane padding + bf16 cast), hoisted out of the
    # forward path.
    we_t, be, wd_t, bd = prepare_params(w_enc, b_enc, w_dec, b_dec)

    encoded, decoded = autoencoder_forward(x, we_t, be, wd_t, bd, h=OUTPUT_DIM)
    jax.block_until_ready((encoded, decoded))

    # Pure-JAX f32 reference. Kernel uses bf16 MXU inputs with f32 accumulate,
    # so compare with bf16-level tolerance.
    enc_ref = jnp.maximum(x @ w_enc.T + b_enc, 0.0)
    dec_ref = enc_ref @ w_dec.T + b_dec
    assert encoded.shape == (B, OUTPUT_DIM)
    assert decoded.shape == (B, INPUT_DIM)
    assert jnp.allclose(encoded, enc_ref, atol=2e-2, rtol=2e-2)
    assert jnp.allclose(decoded, dec_ref, atol=2e-2, rtol=2e-2)

    print("KERNEL_OK")
</pallas_src>

<mosaic_0001>
module attributes {stable_mosaic.version = 11 : i64} {
  func.func @autoencoder_kernel(%arg0: i32, %arg1: memref<8x128xbf16, #tpu.memory_space<vmem>>, %arg2: memref<128x128xbf16, #tpu.memory_space<vmem>>, %arg3: memref<1x128xf32, #tpu.memory_space<vmem>>, %arg4: memref<128x128xbf16, #tpu.memory_space<vmem>>, %arg5: memref<1x128xf32, #tpu.memory_space<vmem>>, %arg6: memref<8x128xf32, #tpu.memory_space<vmem>>, %arg7: memref<8x128xf32, #tpu.memory_space<vmem>>) attributes {dimension_semantics = [#tpu.dimension_semantics<parallel>], iteration_bounds = array<i64: 1>, scalar_prefetch = 0 : i64, scratch_operands = 0 : i64, tpu.core_type = #tpu.core_type<tc>, window_params = [{transform_indices = @transform_0, window_bounds = array<i64: 8, 128>}, {pipeline_mode = #tpu.pipeline_mode<synchronous>, transform_indices = @transform_1, window_bounds = array<i64: 128, 128>}, {pipeline_mode = #tpu.pipeline_mode<synchronous>, transform_indices = @transform_2, window_bounds = array<i64: 1, 128>}, {pipeline_mode = #tpu.pipeline_mode<synchronous>, transform_indices = @transform_3, window_bounds = array<i64: 128, 128>}, {pipeline_mode = #tpu.pipeline_mode<synchronous>, transform_indices = @transform_4, window_bounds = array<i64: 1, 128>}, {transform_indices = @transform_5, window_bounds = array<i64: 8, 128>}, {transform_indices = @transform_6, window_bounds = array<i64: 8, 128>}]} {
    %c0 = arith.constant 0 : index
    %c0_0 = arith.constant 0 : index
    %0 = vector.load %arg1[%c0, %c0_0] : memref<8x128xbf16, #tpu.memory_space<vmem>>, vector<8x128xbf16>
    %c0_1 = arith.constant 0 : index
    %c0_2 = arith.constant 0 : index
    %1 = vector.load %arg2[%c0_1, %c0_2] : memref<128x128xbf16, #tpu.memory_space<vmem>>, vector<128x128xbf16>
    %cst = arith.constant dense<0.000000e+00> : vector<8x128xf32>
    %2 = tpu.matmul %0, %1, %cst {dimension_numbers = #tpu.dot_dimension_numbers<[1], [0], [0], [1], [0, 0, 1, 1], [], []>} : vector<8x128xbf16>, vector<128x128xbf16>, vector<8x128xf32> -> vector<8x128xf32>
    %c0_3 = arith.constant 0 : index
    %c0_4 = arith.constant 0 : index
    %3 = vector.load %arg3[%c0_3, %c0_4] : memref<1x128xf32, #tpu.memory_space<vmem>>, vector<1x128xf32>
    %4 = vector.broadcast %3 : vector<1x128xf32> to vector<8x128xf32>
    %5 = arith.addf %2, %4 : vector<8x128xf32>
    %cst_5 = arith.constant 0.000000e+00 : f32
    %6 = vector.broadcast %cst_5 : f32 to vector<8x128xf32>
    %7 = arith.maximumf %5, %6 : vector<8x128xf32>
    %c0_6 = arith.constant 0 : index
    %c0_7 = arith.constant 0 : index
    %8 = vector.load %arg6[%c0_6, %c0_7] : memref<8x128xf32, #tpu.memory_space<vmem>>, vector<8x128xf32>
    tpu.vector_store %arg6[%c0_6, %c0_7], %7 {strides = array<i32>} : memref<8x128xf32, #tpu.memory_space<vmem>>, vector<8x128xf32>,
    %9 = arith.truncf %7 : vector<8x128xf32> to vector<8x128xbf16>
    %c0_8 = arith.constant 0 : index
    %c0_9 = arith.constant 0 : index
    %10 = vector.load %arg4[%c0_8, %c0_9] : memref<128x128xbf16, #tpu.memory_space<vmem>>, vector<128x128xbf16>
    %cst_10 = arith.constant dense<0.000000e+00> : vector<8x128xf32>
    %11 = tpu.matmul %9, %10, %cst_10 {dimension_numbers = #tpu.dot_dimension_numbers<[1], [0], [0], [1], [0, 0, 1, 1], [], []>} : vector<8x128xbf16>, vector<128x128xbf16>, vector<8x128xf32> -> vector<8x128xf32>
    %c0_11 = arith.constant 0 : index
    %c0_12 = arith.constant 0 : index
    %12 = vector.load %arg5[%c0_11, %c0_12] : memref<1x128xf32, #tpu.memory_space<vmem>>, vector<1x128xf32>
    %13 = vector.broadcast %12 : vector<1x128xf32> to vector<8x128xf32>
    %14 = arith.addf %11, %13 : vector<8x128xf32>
    %c0_13 = arith.constant 0 : index
    %c0_14 = arith.constant 0 : index
    %15 = vector.load %arg7[%c0_13, %c0_14] : memref<8x128xf32, #tpu.memory_space<vmem>>, vector<8x128xf32>
    tpu.vector_store %arg7[%c0_13, %c0_14], %14 {strides = array<i32>} : memref<8x128xf32, #tpu.memory_space<vmem>>, vector<8x128xf32>,
    return
  }
  func.func @transform_0(%arg0: i32) -> (i32, i32) {
    %c0_i32 = arith.constant 0 : i32
    %c0_i32_0 = arith.constant 0 : i32
    return %arg0, %c0_i32 : i32, i32
  }
  func.func @transform_1(%arg0: i32) -> (i32, i32) {
    %c0_i32 = arith.constant 0 : i32
    %c0_i32_0 = arith.constant 0 : i32
    %c0_i32_1 = arith.constant 0 : i32
    return %c0_i32, %c0_i32_0 : i32, i32
  }
  func.func @transform_2(%arg0: i32) -> (i32, i32) {
    %c0_i32 = arith.constant 0 : i32
    %c0_i32_0 = arith.constant 0 : i32
    %c0_i32_1 = arith.constant 0 : i32
    return %c0_i32, %c0_i32_0 : i32, i32
  }
  func.func @transform_3(%arg0: i32) -> (i32, i32) {
    %c0_i32 = arith.constant 0 : i32
    %c0_i32_0 = arith.constant 0 : i32
    %c0_i32_1 = arith.constant 0 : i32
    return %c0_i32, %c0_i32_0 : i32, i32
  }
  func.func @transform_4(%arg0: i32) -> (i32, i32) {
    %c0_i32 = arith.constant 0 : i32
    %c0_i32_0 = arith.constant 0 : i32
    %c0_i32_1 = arith.constant 0 : i32
    return %c0_i32, %c0_i32_0 : i32, i32
  }
  func.func @transform_5(%arg0: i32) -> (i32, i32) {
    %c0_i32 = arith.constant 0 : i32
    %c0_i32_0 = arith.constant 0 : i32
    return %arg0, %c0_i32 : i32, i32
  }
  func.func @transform_6(%arg0: i32) -> (i32, i32) {
    %c0_i32 = arith.constant 0 : i32
    %c0_i32_0 = arith.constant 0 : i32
    return %arg0, %c0_i32 : i32, i32
  }
}

</mosaic_0001>

<bundles_post_ra>
// kernel: autoencoder_forward.1
= control target key start
LH: loop header
LB: loop body
LE: loop exit
PB: predicated region body
PF: predicated region fallthrough
CT: control target
= control target key end

     0   :  { %12 = vsyncpa [#allocation3], 0  ;;  %s511_s0 = inlined_call_operand.vmem [shape: bf16[8,128], index: 0, kind: input, shape index: {}]   ;;  %s512_s1 = inlined_call_operand.hbm [shape: bf16[128,128], index: 1, kind: input, shape index: {}]   ;;  %s513_s2 = inlined_call_operand.vmem [shape: f32[1,128], index: 2, kind: input, shape index: {}]   ;;  %s514_s3 = inlined_call_operand.hbm [shape: bf16[128,128], index: 3, kind: input, shape index: {}]   ;;  %s515_s4 = inlined_call_operand.vmem [shape: f32[1,128], index: 4, kind: input, shape index: {}]   ;;  %s516_s5 = inlined_call_operand.hbm [shape: f32[8,128], index: 5, kind: output, shape index: {0}]   ;;  %s517_s6 = inlined_call_operand.hbm [shape: f32[8,128], index: 6, kind: output, shape index: {1}]  }
   0x1   :  { %13 = vsyncpa [#allocation6], 0 }
   0x2   :  { %14 = vsyncpa [#allocation4], 0 }
   0x3   :  { %15 = vsyncpa [#allocation9], 0  ;;  %s22_s23 = sshll.u32 %s512_s1, 4  ;;  %s449_s24 = smov [#allocation2]   ;;  %s23_s23 = int_to_ptr.hbm [resolvable:$true] %s22_s23 }
   0x4   :  { %s24_s25 = sshll.u32 %s449_s24, 4  ;;  %s37_s28 = sshll.u32 %s514_s3, 4  ;;  %s25_s25 = int_to_ptr.vmem [resolvable:$true] %s24_s25  ;;  %s38_s28 = int_to_ptr.hbm [resolvable:$true] %s37_s28 }
   0x5   :  { %s450_s29 = smov 64   ;;  %s451_s30 = smov 4  }
   0x6   :  { %30 = dma.hbm_to_vmem [thread:$0]  %s23_s23, 1024, %s25_s25, [#allocation3], %s450_s29, %s450_s29, %s451_s30  }
   0x7   :  { %s452_s7 = smov [#allocation5]  }
   0x8   :  { %s39_s8 = sshll.u32 %s452_s7, 4  ;;  %s40_s8 = int_to_ptr.vmem [resolvable:$true] %s39_s8 }
   0x9   :  { %45 = dma.hbm_to_vmem [thread:$0]  %s38_s28, 1024, %s40_s8, [#allocation6], %s450_s29, %s450_s29, %s451_s30  }
   0xa   :  { %441 = dma.done.wait [#allocation3], 1024  }
   0xb   :  { %442 = vsyncadd [#allocation3], 4294966272 }
   0xc   :  { %443 = dma.done.wait [#allocation6], 1024  }
   0xd   :  { %444 = vsyncadd [#allocation6], 4294966272  ;;  %v328_v0 = vld [vmem:[#allocation2 + $0x38] sm:$0xff]  ;;  %v327_v1 = vld [vmem:[#allocation2 + $0x30] sm:$0xff]  ;;  %s453_s11 = smov [#allocation7]   ;;  %s230_s14 = sshll.u32 %s516_s5, 4  ;;  %s231_s14 = int_to_ptr.hbm [resolvable:$true] %s230_s14 }
   0xe   :  { %125 = vmatpush.bf16.msra.mxu0 %v328_v0  ;;  %v336_v2 = vld [vmem:[#allocation5 + $0x38] sm:$0xff]  ;;  %v335_v3 = vld [vmem:[#allocation5 + $0x30] sm:$0xff]  ;;  %v326_v4 = vld [vmem:[#allocation2 + $0x28] sm:$0xff]  ;;  %s228_s12 = sshll.u32 %s453_s11, 4  ;;  %s241_s20 = sshll.u32 %s517_s6, 4  ;;  %s229_s12 = int_to_ptr.vmem [resolvable:$true] %s228_s12  ;;  %s242_s20 = int_to_ptr.hbm [resolvable:$true] %s241_s20 }
   0xf   :  { %209 = vmatpush.bf16.msra.mxu1 %v336_v2  ;;  %v334_v5 = vld [vmem:[#allocation5 + $0x28] sm:$0xff]  ;;  %v325_v6 = vld [vmem:[#allocation2 + $0x20] sm:$0xff]  ;;  %v324_v8 = vld [vmem:[#allocation2 + $0x18] sm:$0xff] }
  0x10   :  { %v333_v7 = vld [vmem:[#allocation5 + $0x20] sm:$0xff]  ;;  %v332_v9 = vld [vmem:[#allocation5 + $0x18] sm:$0xff]  ;;  %v323_v10 = vld [vmem:[#allocation2 + $0x10] sm:$0xff] }
  0x11   :  { %v331_v11 = vld [vmem:[#allocation5 + $0x10] sm:$0xff]  ;;  %v322_v12 = vld [vmem:[#allocation2 + $0x8] sm:$0xff]  ;;  %v321_v13 = vld [vmem:[#allocation2] sm:$0xff] }
  0x12   :  { %126 = vmatpush.bf16.msra.mxu0 %v327_v1  ;;  %v56_v14 = vld [vmem:[%s511_s0] sm:$0xf]  ;;  %v330_v15 = vld [vmem:[#allocation5 + $0x8] sm:$0xff] }
  0x13   :  { %210 = vmatpush.bf16.msra.mxu1 %v335_v3  ;;  %v329_v16 = vld [vmem:[#allocation5] sm:$0xff] }
  0x14   :  { %v343_v17 = vld [vmem:[%s513_s2] ss:$0 sm:$0xff]  ;;  %s454_s2 = smov [#allocation8]  }
  0x15   :  { %v344_v23 = vld [vmem:[%s515_s4] ss:$0 sm:$0xff]  ;;  %s239_s17 = sshll.u32 %s454_s2, 4  ;;  %s240_s17 = int_to_ptr.vmem [resolvable:$true] %s239_s17 }
  0x16   :  { %127 = vmatpush.bf16.msra.mxu0 %v326_v4 }
  0x17   :  { %211 = vmatpush.bf16.msra.mxu1 %v334_v5 }
  0x1a   :  { %128 = vmatpush.bf16.msra.mxu0 %v325_v6 }
  0x1b   :  { %212 = vmatpush.bf16.msra.mxu1 %v333_v7 }
  0x1e   :  { %129 = vmatpush.bf16.msra.mxu0 %v324_v8 }
  0x1f   :  { %213 = vmatpush.bf16.msra.mxu1 %v332_v9 }
  0x22   :  { %130 = vmatpush.bf16.msra.mxu0 %v323_v10 }
  0x23   :  { %214 = vmatpush.bf16.msra.mxu1 %v331_v11 }
  0x26   :  { %131 = vmatpush.bf16.msra.mxu0 %v322_v12 }
  0x27   :  { %215 = vmatpush.bf16.msra.mxu1 %v330_v15 }
  0x2a   :  { %132 = vmatpush.bf16.msra.mxu0 %v321_v13 }
  0x2b   :  { %216 = vmatpush.bf16.msra.mxu1 %v329_v16 }
  0x2d   :  { %133 = vmatmul.bf16.vlgmr.msra.gmra.mxu0 %v56_v14 }
  0xaa   :  { %v134_v18 = vpop.f32.mrf.mxu0 }
  0xab   :  { %v135_v19 = vadd.f32 %v343_v17, %v134_v18 }
  0xad   :  { %v138_v20 = vmax.f32 %v135_v19, 0.0 }
  0xaf   :  { %139 = vst [vmem:[#allocation7] sm:$0xff] %v138_v20  ;;  %v140_v21 = vpack.c.bf16 %v138_v20, %v138_v20 }
  0xb0   :  { %233 = dma.vmem_to_hbm [thread:$0]  %s229_s12, 128, %s231_s14, [#allocation4]  }
  0xb1   :  { %217 = vmatmul.bf16.vlgmr.msra.gmra.mxu1 %v140_v21 }
  0xb2   :  { %v136_v22 = vpop.f32.mrf.mxu0 }
 0x12e   :  { %v218_v24 = vpop.f32.mrf.mxu1 }
 0x12f   :  { %v219_v25 = vadd.f32 %v344_v23, %v218_v24 }
 0x131   :  { %222 = vst [vmem:[#allocation8] sm:$0xff] %v219_v25 }
 0x132   :  { %244 = dma.vmem_to_hbm [thread:$0]  %s240_s17, 128, %s242_s20, [#allocation9]  }
 0x136   :  { %v220_v26 = vpop.f32.mrf.mxu1 }
 0x137   :  { %445 = dma.done.wait [#allocation4], 128  }
 0x138   :  { %446 = vsyncadd [#allocation4], 4294967168 }
 0x139   :  { %447 = dma.done.wait [#allocation9], 128  }
 0x13a   :  { %448 = vsyncadd [#allocation9], 4294967168 }
 0x13b   :  { %253 = vsyncpa [#allocation3], 1 }
 0x13c   :  { %254 = vsyncpa [#allocation6], 1 }
 0x13d   :  { %255 = vsyncpa [#allocation4], 1 }
 0x13e   :  { %256 = vsyncpa [#allocation9], 1 }

</bundles_post_ra>
